<compile_context>
chip_gen: v7x
topology: tpu7x:2x2x1
jax: 0.10.0
libtpu: 0.0.40
codegen_flags: <defaults>
</compile_context>

<pallas_src>
import jax
import jax.numpy as jnp
from jax.experimental import pallas as pl
from jax.experimental.pallas import tpu as pltpu


def _leaky_relu(x, slope):
    return jnp.where(x > 0, x, slope * x)


def cond_upsampler_kernel(x_ref, w1_ref, b1_ref, w2_ref, b2_ref, o_ref):
    # x_ref: (tm_r, Kp), w1: (Kp, Hp), b1: (1, Hp), w2: (Hp, Np), b2: (1, Np),
    # o_ref: (tm_r, Np).  Both matmuls accumulate in f32 on the MXU.
    h = jnp.dot(x_ref[...], w1_ref[...], preferred_element_type=jnp.float32)
    h = h + b1_ref[...].astype(jnp.float32)
    h = _leaky_relu(h, 0.4)
    y = jnp.dot(h.astype(w2_ref.dtype), w2_ref[...],
                preferred_element_type=jnp.float32)
    y = y + b2_ref[...].astype(jnp.float32)
    y = _leaky_relu(y, 0.4)
    o_ref[...] = y.astype(o_ref.dtype)


def _round_up(a, b):
    return (a + b - 1) // b * b


def _pick_pack(target_dim, max_pack=8):
    """Smallest row-packing factor that makes the output lane-dense (128-wide)."""
    if target_dim % 128 == 0:
        return 1
    p = 2
    while p <= max_pack:
        if (p * target_dim) % 128 == 0:
            return p
        p *= 2
    return 1  # fall back to masked stores


def _block_diag(w, pack):
    # kron(I_pack, w): exact block-diagonal expansion so one Linear acts
    # independently on `pack` rows folded into the lane axis.
    if pack == 1:
        return w
    return jnp.kron(jnp.eye(pack, dtype=w.dtype), w)


def cond_upsampler(x, w1, b1, w2, b2, *, tm=512):
    """x: (batch, seq, cond_length) -> (batch, seq, target_dim)."""
    batch, seq, cond_length = x.shape
    hid = w1.shape[1]
    target_dim = w2.shape[1]
    M = batch * seq

    # ---- lane-dense packing (only kicks in when target_dim < 128) ----------
    pack = _pick_pack(target_dim)
    Kp, Hp, Np = pack * cond_length, pack * hid, pack * target_dim
    # NOTE: in production, pack the weights once outside the per-step call.
    w1p = _block_diag(w1, pack)
    w2p = _block_diag(w2, pack)
    b1p = jnp.tile(b1, pack).reshape(1, Hp)
    b2p = jnp.tile(b2, pack).reshape(1, Np)

    # ---- row tiling / padding (handles ragged M) ----------------------------
    row_align = 8 * pack  # packed sublane tile must be a multiple of 8
    # Cap the tile so small problems still give >= 2 grid steps (v7x megacore).
    tm_eff = min(tm, _round_up(pl.cdiv(M, 2), row_align))
    tm_eff = max(row_align, _round_up(tm_eff, row_align))
    M_pad = _round_up(M, tm_eff)
    grid = M_pad // tm_eff
    tm_r = tm_eff // pack          # packed rows per grid step
    R = M_pad // pack              # total packed rows

    x2 = x.reshape(M, cond_length)
    if M_pad != M:
        x2 = jnp.pad(x2, ((0, M_pad - M), (0, 0)))
    xp = x2.reshape(R, Kp)

    # ---- scheduler / VMEM hints ---------------------------------------------
    in_sz = jnp.dtype(x.dtype).itemsize
    w_sz = jnp.dtype(w1.dtype).itemsize
    weight_bytes = (Kp * Hp + Hp * Np + Hp + Np) * w_sz
    io_bytes = R * (Kp + Np) * in_sz
    cost = pl.CostEstimate(
        flops=2 * M_pad * pack * (cond_length * hid + hid * target_dim),
        transcendentals=0,
        bytes_accessed=io_bytes + weight_bytes,
    )
    tile_bytes = tm_r * (Kp + Np) * in_sz
    vmem_est = 2 * tile_bytes + 2 * weight_bytes   # double-buffered tiles + resident weights
    vmem_limit = int(min(64 << 20, max(2 * vmem_est, 32 << 20)))
    # TODO(synk): for very large cond_length/target_dim on v7x, single-buffer the
    # invariant weight blocks (pipeline_mode) / re-tile K,N to stay under 64 MiB.

    out = pl.pallas_call(
        cond_upsampler_kernel,
        out_shape=jax.ShapeDtypeStruct((R, Np), x.dtype),
        grid_spec=pltpu.PrefetchScalarGridSpec(
            num_scalar_prefetch=0,
            grid=(grid,),
            in_specs=[
                pl.BlockSpec((tm_r, Kp), lambda i: (i, 0)),
                pl.BlockSpec((Kp, Hp), lambda i: (0, 0)),
                pl.BlockSpec((1, Hp), lambda i: (0, 0)),
                pl.BlockSpec((Hp, Np), lambda i: (0, 0)),
                pl.BlockSpec((1, Np), lambda i: (0, 0)),
            ],
            out_specs=pl.BlockSpec((tm_r, Np), lambda i: (i, 0)),
        ),
        compiler_params=pltpu.CompilerParams(
            dimension_semantics=("parallel",),
            vmem_limit_bytes=vmem_limit,
        ),
        cost_estimate=cost,
    )(xp, w1p, b1p, w2p, b2p)

    y = out.reshape(M_pad, target_dim)[:M]
    return y.reshape(batch, seq, target_dim)


def init_params(key, cond_length, target_dim):
    """Deterministic init mimicking nn.Linear's uniform(-1/sqrt(fan_in), ...)."""
    hid = target_dim // 2
    k1, k2, k3, k4 = jax.random.split(key, 4)
    bound1 = 1.0 / jnp.sqrt(cond_length)
    bound2 = 1.0 / jnp.sqrt(hid)
    # stored as (in_features, out_features) = W^T of the PyTorch layout
    w1 = jax.random.uniform(k1, (cond_length, hid), jnp.float32, -bound1, bound1)
    b1 = jax.random.uniform(k2, (hid,), jnp.float32, -bound1, bound1)
    w2 = jax.random.uniform(k3, (hid, target_dim), jnp.float32, -bound2, bound2)
    b2 = jax.random.uniform(k4, (target_dim,), jnp.float32, -bound2, bound2)
    return w1, b1, w2, b2


def reference(x, w1, b1, w2, b2):
    h = jnp.einsum("bsc,ch->bsh", x, w1) + b1
    h = jnp.where(h > 0, h, 0.4 * h)
    y = jnp.einsum("bsh,ht->bst", h, w2) + b2
    y = jnp.where(y > 0, y, 0.4 * y)
    return y


if __name__ == "__main__":
    batch, seq = 4, 250            # ragged M = 1000 exercises the padding path
    cond_length, target_dim = 32, 64

    key = jax.random.PRNGKey(0)
    kx, kp = jax.random.split(key)
    x = jax.random.normal(kx, (batch, seq, cond_length), jnp.float32)
    w1, b1, w2, b2 = init_params(kp, cond_length, target_dim)

    # f32 path — checked tightly against the pure-JAX reference.
    out = cond_upsampler(x, w1, b1, w2, b2)
    out = jax.block_until_ready(out)
    ref = reference(x, w1, b1, w2, b2)
    assert out.shape == (batch, seq, target_dim)
    assert jnp.allclose(out, ref, atol=1e-5, rtol=1e-5), "f32 mismatch vs reference"

    # bf16 I/O path (recommended in production: halves HBM traffic on this
    # memory-bound kernel); dots still accumulate in f32.  Loose sanity check
    # only — bf16 carries ~3 significant digits.
    xb = x.astype(jnp.bfloat16)
    out_bf16 = cond_upsampler(
        xb,
        w1.astype(jnp.bfloat16), b1.astype(jnp.bfloat16),
        w2.astype(jnp.bfloat16), b2.astype(jnp.bfloat16),
    )
    out_bf16 = jax.block_until_ready(out_bf16)
    assert out_bf16.shape == (batch, seq, target_dim)
    assert out_bf16.dtype == jnp.bfloat16
    assert jnp.allclose(out_bf16.astype(jnp.float32), ref, atol=0.5, rtol=0.1), \
        "bf16 mismatch vs reference"

    print("KERNEL_OK")
</pallas_src>

<mosaic_0001>
module attributes {stable_mosaic.version = 11 : i64} {
  func.func @cond_upsampler_kernel(%arg0: i32, %arg1: memref<256x64xf32, #tpu.memory_space<vmem>>, %arg2: memref<64x64xf32, #tpu.memory_space<vmem>>, %arg3: memref<1x64xf32, #tpu.memory_space<vmem>>, %arg4: memref<64x128xf32, #tpu.memory_space<vmem>>, %arg5: memref<1x128xf32, #tpu.memory_space<vmem>>, %arg6: memref<256x128xf32, #tpu.memory_space<vmem>>) attributes {dimension_semantics = [#tpu.dimension_semantics<parallel>], iteration_bounds = array<i64: 2>, scalar_prefetch = 0 : i64, scratch_operands = 0 : i64, tpu.core_type = #tpu.core_type<tc>, window_params = [{transform_indices = @transform_0, window_bounds = array<i64: 256, 64>}, {pipeline_mode = #tpu.pipeline_mode<synchronous>, transform_indices = @transform_1, window_bounds = array<i64: 64, 64>}, {pipeline_mode = #tpu.pipeline_mode<synchronous>, transform_indices = @transform_2, window_bounds = array<i64: 1, 64>}, {pipeline_mode = #tpu.pipeline_mode<synchronous>, transform_indices = @transform_3, window_bounds = array<i64: 64, 128>}, {pipeline_mode = #tpu.pipeline_mode<synchronous>, transform_indices = @transform_4, window_bounds = array<i64: 1, 128>}, {transform_indices = @transform_5, window_bounds = array<i64: 256, 128>}]} {
    %c0 = arith.constant 0 : index
    %c0_0 = arith.constant 0 : index
    %0 = vector.load %arg1[%c0, %c0_0] : memref<256x64xf32, #tpu.memory_space<vmem>>, vector<256x64xf32>
    %c0_1 = arith.constant 0 : index
    %c0_2 = arith.constant 0 : index
    %1 = vector.load %arg2[%c0_1, %c0_2] : memref<64x64xf32, #tpu.memory_space<vmem>>, vector<64x64xf32>
    %cst = arith.constant dense<0.000000e+00> : vector<256x64xf32>
    %2 = tpu.matmul %0, %1, %cst {dimension_numbers = #tpu.dot_dimension_numbers<[1], [0], [0], [1], [0, 0, 1, 1], [], []>} : vector<256x64xf32>, vector<64x64xf32>, vector<256x64xf32> -> vector<256x64xf32>
    %c0_3 = arith.constant 0 : index
    %c0_4 = arith.constant 0 : index
    %3 = vector.load %arg3[%c0_3, %c0_4] : memref<1x64xf32, #tpu.memory_space<vmem>>, vector<1x64xf32>
    %4 = vector.broadcast %3 : vector<1x64xf32> to vector<256x64xf32>
    %5 = arith.addf %2, %4 : vector<256x64xf32>
    %cst_5 = arith.constant 0.000000e+00 : f32
    %6 = vector.broadcast %cst_5 : f32 to vector<256x64xf32>
    %7 = arith.cmpf ogt, %5, %6 : vector<256x64xf32>
    %cst_6 = arith.constant 4.000000e-01 : f32
    %8 = vector.broadcast %cst_6 : f32 to vector<256x64xf32>
    %9 = arith.mulf %8, %5 : vector<256x64xf32>
    %10 = arith.select %7, %5, %9 : vector<256x64xi1>, vector<256x64xf32>
    %c0_7 = arith.constant 0 : index
    %c0_8 = arith.constant 0 : index
    %11 = vector.load %arg4[%c0_7, %c0_8] : memref<64x128xf32, #tpu.memory_space<vmem>>, vector<64x128xf32>
    %cst_9 = arith.constant dense<0.000000e+00> : vector<256x128xf32>
    %12 = tpu.matmul %10, %11, %cst_9 {dimension_numbers = #tpu.dot_dimension_numbers<[1], [0], [0], [1], [0, 0, 1, 1], [], []>} : vector<256x64xf32>, vector<64x128xf32>, vector<256x128xf32> -> vector<256x128xf32>
    %c0_10 = arith.constant 0 : index
    %c0_11 = arith.constant 0 : index
    %13 = vector.load %arg5[%c0_10, %c0_11] : memref<1x128xf32, #tpu.memory_space<vmem>>, vector<1x128xf32>
    %14 = vector.broadcast %13 : vector<1x128xf32> to vector<256x128xf32>
    %15 = arith.addf %12, %14 : vector<256x128xf32>
    %cst_12 = arith.constant 0.000000e+00 : f32
    %16 = vector.broadcast %cst_12 : f32 to vector<256x128xf32>
    %17 = arith.cmpf ogt, %15, %16 : vector<256x128xf32>
    %cst_13 = arith.constant 4.000000e-01 : f32
    %18 = vector.broadcast %cst_13 : f32 to vector<256x128xf32>
    %19 = arith.mulf %18, %15 : vector<256x128xf32>
    %20 = arith.select %17, %15, %19 : vector<256x128xi1>, vector<256x128xf32>
    %c0_14 = arith.constant 0 : index
    %c0_15 = arith.constant 0 : index
    %21 = vector.load %arg6[%c0_14, %c0_15] : memref<256x128xf32, #tpu.memory_space<vmem>>, vector<256x128xf32>
    tpu.vector_store %arg6[%c0_14, %c0_15], %20 {strides = array<i32>} : memref<256x128xf32, #tpu.memory_space<vmem>>, vector<256x128xf32>,
    return
  }
  func.func @transform_0(%arg0: i32) -> (i32, i32) {
    %c0_i32 = arith.constant 0 : i32
    %c0_i32_0 = arith.constant 0 : i32
    return %arg0, %c0_i32 : i32, i32
  }
  func.func @transform_1(%arg0: i32) -> (i32, i32) {
    %c0_i32 = arith.constant 0 : i32
    %c0_i32_0 = arith.constant 0 : i32
    %c0_i32_1 = arith.constant 0 : i32
    return %c0_i32, %c0_i32_0 : i32, i32
  }
  func.func @transform_2(%arg0: i32) -> (i32, i32) {
    %c0_i32 = arith.constant 0 : i32
    %c0_i32_0 = arith.constant 0 : i32
    %c0_i32_1 = arith.constant 0 : i32
    return %c0_i32, %c0_i32_0 : i32, i32
  }
  func.func @transform_3(%arg0: i32) -> (i32, i32) {
    %c0_i32 = arith.constant 0 : i32
    %c0_i32_0 = arith.constant 0 : i32
    %c0_i32_1 = arith.constant 0 : i32
    return %c0_i32, %c0_i32_0 : i32, i32
  }
  func.func @transform_4(%arg0: i32) -> (i32, i32) {
    %c0_i32 = arith.constant 0 : i32
    %c0_i32_0 = arith.constant 0 : i32
    %c0_i32_1 = arith.constant 0 : i32
    return %c0_i32, %c0_i32_0 : i32, i32
  }
  func.func @transform_5(%arg0: i32) -> (i32, i32) {
    %c0_i32 = arith.constant 0 : i32
    %c0_i32_0 = arith.constant 0 : i32
    return %arg0, %c0_i32 : i32, i32
  }
}

</mosaic_0001>

<bundles_post_ra>
// kernel: tpu_custom_call.1
= control target key start
LH: loop header
LB: loop body
LE: loop exit
PB: predicated region body
PF: predicated region fallthrough
CT: control target
= control target key end

     0   :  { %10 = vsyncpa [#allocation3], 0  ;;  %s2049_s0 = inlined_call_operand.vmem [shape: f32[512,64], index: 0, kind: input, shape index: {}]   ;;  %s2050_s1 = inlined_call_operand.vmem [shape: f32[64,64], index: 1, kind: input, shape index: {}]   ;;  %s2051_s2 = inlined_call_operand.vmem [shape: f32[1,64], index: 2, kind: input, shape index: {}]   ;;  %s2052_s3 = inlined_call_operand.vmem [shape: f32[64,128], index: 3, kind: input, shape index: {}]   ;;  %s2053_s4 = inlined_call_operand.vmem [shape: f32[1,128], index: 4, kind: input, shape index: {}]   ;;  %s2054_s5 = inlined_call_operand.hbm [shape: f32[512,128], index: 5, kind: output, shape index: {}]  }
   0x1   :  { %12 = vsyncpa [#allocation3 + $0x1], 0  ;;  %s1688_s18 = smov 0   ;;  %s1690_s19 = smov 0  }
   0x2   :  { %s1692_s20 = smov 0   ;;  %s1694_s21 = smov 0  }
   0x3 LB: > { %s1709_s22 = sadd.s32 4294967295, %s1653_s21   ;;  %s1231_s23 = sadd.s32 4294967294, %s1653_s21   ;;  %s1653_s21 = sphi %s1694_s21, %s2060_s21   ;;  %s1649_s20 = sphi %s1692_s20, %s2059_s20   ;;  %s1645_s19 = sphi %s1690_s19, %s2058_s19   ;;  %s1641_s18 = sphi %s1688_s18, %s2057_s18  }
   0x4   : > { %s1713_s24 = sadd.s32 1, %s1653_s21   ;;  %s135_s25 = sadd.s32 1, %s1649_s20 }
   0x5   : > { %s132_s26 = ssub.s32 %s1653_s21, %s1713_s24  ;;  %p145_p0 = scmp.ne.s32.totalorder %s1649_s20, %s1645_s19 }
   0x6   : > { %p133_p1 = scmp.eq.s32.totalorder %s132_s26, 0  ;;  %p146_p2 = scmp.eq.s32.totalorder %s1709_s22, 1 }
   0x7   : > { %p151_p3 = scmp.ne.s32.totalorder %s1645_s19, %s1641_s18  ;;  %p152_p4 = scmp.eq.s32.totalorder %s1231_s23, 1 }
   0x8   : > { %s1724_s27 = scalar_select %p133_p1, %s1649_s20, %s135_s25  }
   0x9   : > { %p1726_p5 = por %p146_p2, %p145_p0  ;;  %p1730_p6 = por %p152_p4, %p151_p3 }
   0xa   : > { %p1234_p7 = scmp.ge.s32.totalorder %s1653_s21, 1  ;;  %p191_p8 = scmp.lt.s32.totalorder %s1653_s21, 3 }
   0xc   : > { %p192_p9 = pnand %p1234_p7, %p191_p8 }
   0xd   : > { %v258_v0 = vld [vmem:[%s2050_s1] sm:$0xff] (!%p192_p9)  ;;  %v259_v1 = vld [vmem:[%s2050_s1 + $0x8] sm:$0xff] (!%p192_p9)  ;;  %v260_v2 = vld [vmem:[%s2050_s1 + $0x10] sm:$0xff] (!%p192_p9)  ;;  %s1236_s11 = sshll.u32 (!%p192_p9), %s1709_s22, 5  ;;  %vm273_vm0 = vcmask (!%p192_p9), 523264   ;;  %s216_s13 = sand.u32 (!%p192_p9), 1, %s1645_s19  }
   0xe   : > { %195 = sbr.rel (%p192_p9) target bundleno = 544 (0x220), region = 40  ;;  %v1518_v3 = vpack.c.bf16 (!%p192_p9), %v259_v1, %v258_v0  ;;  %v261_v4 = vld [vmem:[%s2050_s1 + $0x18] sm:$0xff] (!%p192_p9)  ;;  %p220_p10 = scmp.lt.s32.totalorder (!%p192_p9), %s1236_s11, 63  ;;  %v262_v6 = vld [vmem:[%s2050_s1 + $0x20] sm:$0xff] (!%p192_p9)  ;;  %v263_v7 = vld [vmem:[%s2050_s1 + $0x28] sm:$0xff] (!%p192_p9) }
   0xf   : > { %v1522_v5 = vpack.c.bf16 (!%p192_p9), %v261_v4, %v260_v2  ;;  %v691_v8 = vld [vmem:[%s2052_s3] sm:$0xff] (!%p192_p9)  ;;  %v692_v9 = vld [vmem:[%s2052_s3 + $0x8] sm:$0xff] (!%p192_p9)  ;;  %v693_v10 = vld [vmem:[%s2052_s3 + $0x10] sm:$0xff] (!%p192_p9)  ;;  %v1526_v13 = vpack.c.bf16 (!%p192_p9), %v263_v7, %v262_v6  ;;  %s1235_s16 = sshll.u32 (!%p192_p9), %s216_s13, 8  ;;  %s1655_s7 = smov (!%p192_p9), [#allocation2]  }
  0x10   : > { %1519 = vmatprep.subr.bf16.mxu0 (!%p192_p9), %v1518_v3  ;;  %v694_v11 = vld [vmem:[%s2052_s3 + $0x18] sm:$0xff] (!%p192_p9)  ;;  %v1534_v12 = vpack.c.bf16 (!%p192_p9), %v692_v9, %v691_v8  ;;  %v264_v15 = vld [vmem:[%s2050_s1 + $0x30] sm:$0xff] (!%p192_p9)  ;;  %v695_v50 = vld [vmem:[%s2052_s3 + $0x20] sm:$0xff] (!%p192_p9)  ;;  %s1934_s17 = scalar_lea.vmem (!%p192_p9), [#allocation2], %s1235_s16  ;;  %s1595_s8 = sshll.u32 (!%p192_p9), %s1655_s7, 4  ;;  %s1596_s8 = int_to_ptr.vmem [resolvable:$false] %s1595_s8 }
  0x11   : > { %1521 = vmatpush3.bf16.msra.mxu0 (!%p192_p9), %v1518_v3  ;;  %v1538_v14 = vpack.c.bf16 (!%p192_p9), %v694_v11, %v693_v10  ;;  %v265_v16 = vld [vmem:[%s2050_s1 + $0x38] sm:$0xff] (!%p192_p9)  ;;  %v696_v51 = vld [vmem:[%s2052_s3 + $0x28] sm:$0xff] (!%p192_p9)  ;;  %v697_v53 = vld [vmem:[%s2052_s3 + $0x30] sm:$0xff] (!%p192_p9)  ;;  %s1597_s9 = scalar_lea.vmem (!%p192_p9), %s1596_s8, 8192 }
  0x12   : > { %1523 = vmatprep.subr.bf16.mxu0 (!%p192_p9), %v1522_v5  ;;  %1535 = vmatprep.subr.bf16.mxu1 (!%p192_p9), %v1534_v12  ;;  %v1530_v18 = vpack.c.bf16 (!%p192_p9), %v265_v16, %v264_v15  ;;  %v1542_v52 = vpack.c.bf16 (!%p192_p9), %v696_v51, %v695_v50  ;;  %v698_v54 = vld [vmem:[%s2052_s3 + $0x38] sm:$0xff] (!%p192_p9)  ;;  %v1857_v56 = vld [vmem:[%s2051_s2] ss:$0 sm:$0xff] (!%p192_p9) }
  0x13   : > { %1537 = vmatpush3.bf16.msra.mxu1 (!%p192_p9), %v1534_v12  ;;  %v1546_v55 = vpack.c.bf16 (!%p192_p9), %v698_v54, %v697_v53 }
  0x14   : > { %1539 = vmatprep.subr.bf16.mxu1 (!%p192_p9), %v1538_v14 }
  0x15   : > { %s2062_s11 = smov (!%p220_p10, %s1236_s11), 63  ;;  %1525 = vmatpush3.bf16.msra.mxu0 %v1522_v5 }
  0x16   : > { %s1237_s10 = sshll.u32 %s2062_s11, 3  ;;  %1527 = vmatprep.subr.bf16.mxu0 %v1526_v13  ;;  %s1169_s11 = sshll.u32 %s1934_s17, 4  ;;  %s2002_s11 = int_to_ptr.vmem [resolvable:$true] %s1169_s11 }
  0x17   : > { %s1776_s23 = scalar_lea.vmem %s2049_s0, %s1237_s10  ;;  %1541 = vmatpush3.bf16.msra.mxu1 %v1538_v14  ;;  %s1591_s6 = scalar_lea.vmem %s2002_s11, 4096 }
  0x18   : > { %v226_v17 = vld [vmem:[%s1776_s23] sm:$0xff]  ;;  %v227_v19 = vld [vmem:[%s1776_s23 + $0x8] sm:$0xff]  ;;  %v228_v20 = vld [vmem:[%s1776_s23 + $0x10] sm:$0xff]  ;;  %1543 = vmatprep.subr.bf16.mxu1 %v1542_v52  ;;  %p1592_p11 = scmp.ne.s32.totalorder %s2002_s11, %s1591_s6  ;;  %p1598_p0 = scmp.lt.s32.totalorder %s2002_s11, %s1596_s8 }
  0x19   : > { %1406 = vmatprep.mubr.msk.f32.mxu0 %vm273_vm0, %v226_v17  ;;  %1529 = vmatpush3.bf16.msra.mxu0 %v1526_v13  ;;  %v229_v21 = vld [vmem:[%s1776_s23 + $0x18] sm:$0xff]  ;;  %v230_v22 = vld [vmem:[%s1776_s23 + $0x20] sm:$0xff]  ;;  %v231_v23 = vld [vmem:[%s1776_s23 + $0x28] sm:$0xff]  ;;  %p1599_p1 = scmp.lt.s32.totalorder %s1597_s9, %s1591_s6 }
  0x1a   : > { %1531 = vmatprep.subr.bf16.mxu0 %v1530_v18  ;;  %v232_v24 = vld [vmem:[%s1776_s23 + $0x30] sm:$0xff]  ;;  %v233_v25 = vld [vmem:[%s1776_s23 + $0x38] sm:$0xff]  ;;  %v234_v26 = vld [vmem:[%s1776_s23 + $0x40] sm:$0xff]  ;;  %p1593_p12 = pnand %p1592_p11, %p1726_p5 }
  0x1b   : > { %v235_v27 = vld [vmem:[%s1776_s23 + $0x48] sm:$0xff]  ;;  %v236_v28 = vld [vmem:[%s1776_s23 + $0x50] sm:$0xff]  ;;  %v237_v29 = vld [vmem:[%s1776_s23 + $0x58] sm:$0xff]  ;;  %1545 = vmatpush3.bf16.msra.mxu1 %v1542_v52  ;;  %p1600_p2 = por %p1599_p1, %p1598_p0 }
  0x1c   : > { %v238_v30 = vld [vmem:[%s1776_s23 + $0x60] sm:$0xff]  ;;  %v239_v31 = vld [vmem:[%s1776_s23 + $0x68] sm:$0xff]  ;;  %v240_v32 = vld [vmem:[%s1776_s23 + $0x70] sm:$0xff]  ;;  %1547 = vmatprep.subr.bf16.mxu1 %v1546_v55  ;;  %p1594_p13 = pneg %p1593_p12 }
  0x1d   : > { %1533 = vmatpush3.bf16.msra.mxu0 %v1530_v18  ;;  %v241_v33 = vld [vmem:[%s1776_s23 + $0x78] sm:$0xff]  ;;  %v242_v34 = vld [vmem:[%s1776_s23 + $0x80] sm:$0xff]  ;;  %v243_v35 = vld [vmem:[%s1776_s23 + $0x88] sm:$0xff] }
  0x1e   : > { %v244_v36 = vld [vmem:[%s1776_s23 + $0x90] sm:$0xff]  ;;  %v245_v37 = vld [vmem:[%s1776_s23 + $0x98] sm:$0xff]  ;;  %v246_v38 = vld [vmem:[%s1776_s23 + $0xa0] sm:$0xff]  ;;  %p1601_p3 = pnand %p1600_p2, %p1594_p13 }
  0x1f   : > { %v247_v39 = vld [vmem:[%s1776_s23 + $0xa8] sm:$0xff]  ;;  %v248_v40 = vld [vmem:[%s1776_s23 + $0xb0] sm:$0xff]  ;;  %v249_v41 = vld [vmem:[%s1776_s23 + $0xb8] sm:$0xff]  ;;  %1549 = vmatpush3.bf16.msra.mxu1 %v1546_v55 }
  0x20   : > { %1407 = vmatmul.mubr.msk.f32.vlgmr.msra.gmra.mrb[0].mxu0 %vm273_vm0, %v227_v19  ;;  %v250_v42 = vld [vmem:[%s1776_s23 + $0xc0] sm:$0xff]  ;;  %v251_v43 = vld [vmem:[%s1776_s23 + $0xc8] sm:$0xff]  ;;  %v252_v44 = vld [vmem:[%s1776_s23 + $0xd0] sm:$0xff] }
  0x21   : > { %1409 = vmatprep.mubr.msk.f32.mxu0 %vm273_vm0, %v228_v20  ;;  %v253_v45 = vld [vmem:[%s1776_s23 + $0xd8] sm:$0xff]  ;;  %v254_v46 = vld [vmem:[%s1776_s23 + $0xe0] sm:$0xff]  ;;  %v255_v47 = vld [vmem:[%s1776_s23 + $0xe8] sm:$0xff] }
  0x22   : > { %v256_v48 = vld [vmem:[%s1776_s23 + $0xf0] sm:$0xff]  ;;  %v257_v49 = vld [vmem:[%s1776_s23 + $0xf8] sm:$0xff]  ;;  %s1309_s23 = sshll.u32 %s1709_s22, 12  ;;  %s2008_s22 = scalar_lea.sflag [#allocation3], %s216_s13 }
  0x23   : > { %s2000_s30 = scalar_lea.hbm %s2054_s5, %s1309_s23 }
  0x24   : > { %1410 = vmatmul.mubr.msk.f32.gmra.mrb[2].mxu0 %vm273_vm0, %v229_v21 }
  0x25   : > { %1412 = vmatprep.mubr.msk.f32.mxu0 %vm273_vm0, %v230_v22 }
  0x28   : > { %1413 = vmatmul.mubr.msk.f32.gmra.mrb[4].mxu0 %vm273_vm0, %v231_v23 }
  0x29   : > { %1415 = vmatprep.mubr.msk.f32.mxu0 %vm273_vm0, %v232_v24 }
  0x2c   : > { %1416 = vmatmul.mubr.msk.f32.gmra.mrb[6].mxu0 %vm273_vm0, %v233_v25 }
  0x2d   : > { %1418 = vmatprep.mubr.msk.f32.mxu0 %vm273_vm0, %v234_v26 }
  0x30   : > { %1419 = vmatmul.mubr.msk.f32.gmra.mrb[8].mxu0 %vm273_vm0, %v235_v27 }
  0x31   : > { %1421 = vmatprep.mubr.msk.f32.mxu0 %vm273_vm0, %v236_v28 }
  0x34   : > { %1422 = vmatmul.mubr.msk.f32.gmra.mrb[10].mxu0 %vm273_vm0, %v237_v29 }
  0x35   : > { %1424 = vmatprep.mubr.msk.f32.mxu0 %vm273_vm0, %v238_v30 }
  0x38   : > { %1425 = vmatmul.mubr.msk.f32.gmra.mrb[12].mxu0 %vm273_vm0, %v239_v31 }
  0x39   : > { %1427 = vmatprep.mubr.msk.f32.mxu0 %vm273_vm0, %v240_v32 }
  0x3c   : > { %1428 = vmatmul.mubr.msk.f32.gmra.mrb[14].mxu0 %vm273_vm0, %v241_v33 }
  0x3d   : > { %1430 = vmatprep.mubr.msk.f32.mxu0 %vm273_vm0, %v242_v34 }
  0x40   : > { %1431 = vmatmul.mubr.msk.f32.gmra.mrb[16].mxu0 %vm273_vm0, %v243_v35 }
  0x41   : > { %1433 = vmatprep.mubr.msk.f32.mxu0 %vm273_vm0, %v244_v36 }
  0x44   : > { %1434 = vmatmul.mubr.msk.f32.gmra.mrb[18].mxu0 %vm273_vm0, %v245_v37 }
  0x45   : > { %1436 = vmatprep.mubr.msk.f32.mxu0 %vm273_vm0, %v246_v38 }
  0x48   : > { %1437 = vmatmul.mubr.msk.f32.gmra.mrb[20].mxu0 %vm273_vm0, %v247_v39 }
  0x49   : > { %1439 = vmatprep.mubr.msk.f32.mxu0 %vm273_vm0, %v248_v40 }
  0x4c   : > { %1440 = vmatmul.mubr.msk.f32.gmra.mrb[22].mxu0 %vm273_vm0, %v249_v41 }
  0x4d   : > { %1442 = vmatprep.mubr.msk.f32.mxu0 %vm273_vm0, %v250_v42 }
  0x50   : > { %1443 = vmatmul.mubr.msk.f32.gmra.mrb[24].mxu0 %vm273_vm0, %v251_v43 }
  0x51   : > { %1445 = vmatprep.mubr.msk.f32.mxu0 %vm273_vm0, %v252_v44 }
  0x54   : > { %1446 = vmatmul.mubr.msk.f32.gmra.mrb[26].mxu0 %vm273_vm0, %v253_v45 }
  0x55   : > { %1448 = vmatprep.mubr.msk.f32.mxu0 %vm273_vm0, %v254_v46 }
  0x58   : > { %1449 = vmatmul.mubr.msk.f32.gmra.mrb[28].mxu0 %vm273_vm0, %v255_v47 }
  0x59   : > { %1451 = vmatprep.mubr.msk.f32.mxu0 %vm273_vm0, %v256_v48 }
  0x5c   : > { %1452 = vmatmul.mubr.msk.f32.gmra.mrb[30].mxu0 %vm273_vm0, %v257_v49 }
  0xf3   : > { %v1408_v57 = vpop.f32.mrb[0].mxu0 }
  0xf4   : > { %v442_v58 = vadd.f32 %v1408_v57, %v1857_v56  ;;  %v436_v59 = vpop.f32.mrb[1].mxu0 }
  0xf5   : > { %v437_v60 = vadd.f32 %v1857_v56, %v436_v59 }
  0xf6   : > { %v628_v61 = vmul.f32 0.4, %v442_v58  ;;  %vm596_vm1 = vcmp.gt.f32.partialorder %v442_v58, 0.0 }
  0xf7   : > { %v1411_v62 = vpop.f32.mrb[2].mxu0  ;;  %vm595_vm2 = vcmp.gt.f32.partialorder %v437_v60, 0.0  ;;  %v627_v63 = vmul.f32 0.4, %v437_v60 }
  0xf8   : > { %v452_v0 = vadd.f32 %v1411_v62, %v1857_v56  ;;  %v446_v1 = vpop.f32.mrb[3].mxu0  ;;  %v660_v5 = vsel %vm596_vm1, %v442_v58, %v628_v61 }
  0xf9   : > { %v447_v2 = vadd.f32 %v1857_v56, %v446_v1  ;;  %v659_v3 = vsel %vm595_vm2, %v437_v60, %v627_v63 }
  0xfa   : > { %v630_v4 = vmul.f32 0.4, %v452_v0  ;;  %1470 = vmatprep.mubr.msk.f32.mxu1 %vm273_vm0, %v659_v3  ;;  %vm598_vm3 = vcmp.gt.f32.partialorder %v452_v0, 0.0 }
  0xfb   : > { %vm597_vm4 = vcmp.gt.f32.partialorder %v447_v2, 0.0  ;;  %v629_v6 = vmul.f32 0.4, %v447_v2  ;;  %v1414_v7 = vpop.f32.mrb[4].mxu0  ;;  %1471 = vmatmul.mubr.msk.f32.vlgmr.msra.gmra.mrb[0].mxu1 %vm273_vm0, %v660_v5 }
  0xfc   : > { %v462_v8 = vadd.f32 %v1414_v7, %v1857_v56  ;;  %v456_v9 = vpop.f32.mrb[5].mxu0  ;;  %v662_v13 = vsel %vm598_vm3, %v452_v0, %v630_v4 }
  0xfd   : > { %v457_v10 = vadd.f32 %v1857_v56, %v456_v9  ;;  %v661_v11 = vsel %vm597_vm4, %v447_v2, %v629_v6 }
  0xfe   : > { %v632_v12 = vmul.f32 0.4, %v462_v8  ;;  %1473 = vmatprep.mubr.msk.f32.mxu1 %vm273_vm0, %v661_v11  ;;  %vm600_vm5 = vcmp.gt.f32.partialorder %v462_v8, 0.0 }
  0xff   : > { %vm599_vm6 = vcmp.gt.f32.partialorder %v457_v10, 0.0  ;;  %v631_v14 = vmul.f32 0.4, %v457_v10  ;;  %v1417_v15 = vpop.f32.mrb[6].mxu0  ;;  %1474 = vmatmul.mubr.msk.f32.gmra.mrb[2].mxu1 %vm273_vm0, %v662_v13 }
 0x100   : > { %v472_v16 = vadd.f32 %v1417_v15, %v1857_v56  ;;  %v466_v17 = vpop.f32.mrb[7].mxu0  ;;  %v664_v21 = vsel %vm600_vm5, %v462_v8, %v632_v12 }
 0x101   : > { %v467_v18 = vadd.f32 %v1857_v56, %v466_v17  ;;  %v663_v19 = vsel %vm599_vm6, %v457_v10, %v631_v14 }
 0x102   : > { %v634_v20 = vmul.f32 0.4, %v472_v16  ;;  %1476 = vmatprep.mubr.msk.f32.mxu1 %vm273_vm0, %v663_v19  ;;  %vm602_vm7 = vcmp.gt.f32.partialorder %v472_v16, 0.0 }
 0x103   : > { %vm601_vm8 = vcmp.gt.f32.partialorder %v467_v18, 0.0  ;;  %v633_v22 = vmul.f32 0.4, %v467_v18  ;;  %v1420_v23 = vpop.f32.mrb[8].mxu0  ;;  %1477 = vmatmul.mubr.msk.f32.gmra.mrb[4].mxu1 %vm273_vm0, %v664_v21 }
 0x104   : > { %v482_v24 = vadd.f32 %v1420_v23, %v1857_v56  ;;  %v476_v25 = vpop.f32.mrb[9].mxu0  ;;  %v666_v29 = vsel %vm602_vm7, %v472_v16, %v634_v20 }
 0x105   : > { %v477_v26 = vadd.f32 %v1857_v56, %v476_v25  ;;  %v665_v27 = vsel %vm601_vm8, %v467_v18, %v633_v22 }
 0x106   : > { %v636_v28 = vmul.f32 0.4, %v482_v24  ;;  %1479 = vmatprep.mubr.msk.f32.mxu1 %vm273_vm0, %v665_v27  ;;  %vm604_vm9 = vcmp.gt.f32.partialorder %v482_v24, 0.0 }
 0x107   : > { %vm603_vm10 = vcmp.gt.f32.partialorder %v477_v26, 0.0  ;;  %v635_v30 = vmul.f32 0.4, %v477_v26  ;;  %v1423_v31 = vpop.f32.mrb[10].mxu0  ;;  %1480 = vmatmul.mubr.msk.f32.gmra.mrb[6].mxu1 %vm273_vm0, %v666_v29 }
 0x108   : > { %v492_v32 = vadd.f32 %v1423_v31, %v1857_v56  ;;  %v486_v33 = vpop.f32.mrb[11].mxu0  ;;  %v668_v37 = vsel %vm604_vm9, %v482_v24, %v636_v28 }
 0x109   : > { %v487_v34 = vadd.f32 %v1857_v56, %v486_v33  ;;  %v667_v35 = vsel %vm603_vm10, %v477_v26, %v635_v30 }
 0x10a   : > { %v638_v36 = vmul.f32 0.4, %v492_v32  ;;  %1482 = vmatprep.mubr.msk.f32.mxu1 %vm273_vm0, %v667_v35  ;;  %vm606_vm11 = vcmp.gt.f32.partialorder %v492_v32, 0.0 }
 0x10b   : > { %vm605_vm12 = vcmp.gt.f32.partialorder %v487_v34, 0.0  ;;  %v637_v38 = vmul.f32 0.4, %v487_v34  ;;  %v1426_v39 = vpop.f32.mrb[12].mxu0  ;;  %1483 = vmatmul.mubr.msk.f32.gmra.mrb[8].mxu1 %vm273_vm0, %v668_v37 }
 0x10c   : > { %v502_v40 = vadd.f32 %v1426_v39, %v1857_v56  ;;  %v496_v41 = vpop.f32.mrb[13].mxu0  ;;  %v670_v45 = vsel %vm606_vm11, %v492_v32, %v638_v36 }
 0x10d   : > { %v497_v42 = vadd.f32 %v1857_v56, %v496_v41  ;;  %v669_v43 = vsel %vm605_vm12, %v487_v34, %v637_v38 }
 0x10e   : > { %v640_v44 = vmul.f32 0.4, %v502_v40  ;;  %1485 = vmatprep.mubr.msk.f32.mxu1 %vm273_vm0, %v669_v43  ;;  %vm608_vm13 = vcmp.gt.f32.partialorder %v502_v40, 0.0 }
 0x10f   : > { %vm607_vm14 = vcmp.gt.f32.partialorder %v497_v42, 0.0  ;;  %v639_v46 = vmul.f32 0.4, %v497_v42  ;;  %v1429_v47 = vpop.f32.mrb[14].mxu0  ;;  %1486 = vmatmul.mubr.msk.f32.gmra.mrb[10].mxu1 %vm273_vm0, %v670_v45 }
 0x110   : > { %v512_v48 = vadd.f32 %v1429_v47, %v1857_v56  ;;  %v506_v49 = vpop.f32.mrb[15].mxu0  ;;  %v672_v53 = vsel %vm608_vm13, %v502_v40, %v640_v44 }
 0x111   : > { %v507_v50 = vadd.f32 %v1857_v56, %v506_v49  ;;  %v671_v51 = vsel %vm607_vm14, %v497_v42, %v639_v46 }
 0x112   : > { %v642_v52 = vmul.f32 0.4, %v512_v48  ;;  %1488 = vmatprep.mubr.msk.f32.mxu1 %vm273_vm0, %v671_v51  ;;  %vm610_vm15 = vcmp.gt.f32.partialorder %v512_v48, 0.0 }
 0x113   : > { %vm609_vm1 = vcmp.gt.f32.partialorder %v507_v50, 0.0  ;;  %v641_v54 = vmul.f32 0.4, %v507_v50  ;;  %v1432_v55 = vpop.f32.mrb[16].mxu0  ;;  %1489 = vmatmul.mubr.msk.f32.gmra.mrb[12].mxu1 %vm273_vm0, %v672_v53 }
 0x114   : > { %v522_v57 = vadd.f32 %v1432_v55, %v1857_v56  ;;  %v516_v58 = vpop.f32.mrb[17].mxu0  ;;  %v674_v62 = vsel %vm610_vm15, %v512_v48, %v642_v52 }
 0x115   : > { %v517_v59 = vadd.f32 %v1857_v56, %v516_v58  ;;  %v673_v60 = vsel %vm609_vm1, %v507_v50, %v641_v54 }
 0x116   : > { %v644_v61 = vmul.f32 0.4, %v522_v57  ;;  %1491 = vmatprep.mubr.msk.f32.mxu1 %vm273_vm0, %v673_v60  ;;  %vm612_vm2 = vcmp.gt.f32.partialorder %v522_v57, 0.0 }
 0x117   : > { %vm611_vm3 = vcmp.gt.f32.partialorder %v517_v59, 0.0  ;;  %v643_v63 = vmul.f32 0.4, %v517_v59  ;;  %v1435_v0 = vpop.f32.mrb[18].mxu0  ;;  %1492 = vmatmul.mubr.msk.f32.gmra.mrb[14].mxu1 %vm273_vm0, %v674_v62 }
 0x118   : > { %v532_v1 = vadd.f32 %v1435_v0, %v1857_v56  ;;  %v526_v2 = vpop.f32.mrb[19].mxu0  ;;  %v676_v6 = vsel %vm612_vm2, %v522_v57, %v644_v61 }
 0x119   : > { %v527_v3 = vadd.f32 %v1857_v56, %v526_v2  ;;  %v675_v4 = vsel %vm611_vm3, %v517_v59, %v643_v63 }
 0x11a   : > { %v646_v5 = vmul.f32 0.4, %v532_v1  ;;  %1494 = vmatprep.mubr.msk.f32.mxu1 %vm273_vm0, %v675_v4  ;;  %vm614_vm4 = vcmp.gt.f32.partialorder %v532_v1, 0.0 }
 0x11b   : > { %vm613_vm5 = vcmp.gt.f32.partialorder %v527_v3, 0.0  ;;  %v645_v7 = vmul.f32 0.4, %v527_v3  ;;  %v1438_v8 = vpop.f32.mrb[20].mxu0  ;;  %1495 = vmatmul.mubr.msk.f32.gmra.mrb[16].mxu1 %vm273_vm0, %v676_v6 }
 0x11c   : > { %v542_v9 = vadd.f32 %v1438_v8, %v1857_v56  ;;  %v536_v10 = vpop.f32.mrb[21].mxu0  ;;  %v678_v14 = vsel %vm614_vm4, %v532_v1, %v646_v5 }
 0x11d   : > { %v537_v11 = vadd.f32 %v1857_v56, %v536_v10  ;;  %v677_v12 = vsel %vm613_vm5, %v527_v3, %v645_v7 }
 0x11e   : > { %v648_v13 = vmul.f32 0.4, %v542_v9  ;;  %1497 = vmatprep.mubr.msk.f32.mxu1 %vm273_vm0, %v677_v12  ;;  %vm616_vm6 = vcmp.gt.f32.partialorder %v542_v9, 0.0 }
 0x11f   : > { %vm615_vm7 = vcmp.gt.f32.partialorder %v537_v11, 0.0  ;;  %v647_v15 = vmul.f32 0.4, %v537_v11  ;;  %v1441_v16 = vpop.f32.mrb[22].mxu0  ;;  %1498 = vmatmul.mubr.msk.f32.gmra.mrb[18].mxu1 %vm273_vm0, %v678_v14 }
 0x120   : > { %v552_v17 = vadd.f32 %v1441_v16, %v1857_v56  ;;  %v546_v18 = vpop.f32.mrb[23].mxu0  ;;  %v680_v22 = vsel %vm616_vm6, %v542_v9, %v648_v13 }
 0x121   : > { %v547_v19 = vadd.f32 %v1857_v56, %v546_v18  ;;  %v679_v20 = vsel %vm615_vm7, %v537_v11, %v647_v15 }
 0x122   : > { %v650_v21 = vmul.f32 0.4, %v552_v17  ;;  %1500 = vmatprep.mubr.msk.f32.mxu1 %vm273_vm0, %v679_v20  ;;  %vm618_vm8 = vcmp.gt.f32.partialorder %v552_v17, 0.0 }
 0x123   : > { %vm617_vm9 = vcmp.gt.f32.partialorder %v547_v19, 0.0  ;;  %v649_v23 = vmul.f32 0.4, %v547_v19  ;;  %v1444_v24 = vpop.f32.mrb[24].mxu0  ;;  %1501 = vmatmul.mubr.msk.f32.gmra.mrb[20].mxu1 %vm273_vm0, %v680_v22 }
 0x124   : > { %v562_v25 = vadd.f32 %v1444_v24, %v1857_v56  ;;  %v556_v26 = vpop.f32.mrb[25].mxu0  ;;  %v682_v30 = vsel %vm618_vm8, %v552_v17, %v650_v21 }
 0x125   : > { %v557_v27 = vadd.f32 %v1857_v56, %v556_v26  ;;  %v681_v28 = vsel %vm617_vm9, %v547_v19, %v649_v23 }
 0x126   : > { %v652_v29 = vmul.f32 0.4, %v562_v25  ;;  %1503 = vmatprep.mubr.msk.f32.mxu1 %vm273_vm0, %v681_v28  ;;  %vm620_vm10 = vcmp.gt.f32.partialorder %v562_v25, 0.0 }
 0x127   : > { %vm619_vm11 = vcmp.gt.f32.partialorder %v557_v27, 0.0  ;;  %v651_v31 = vmul.f32 0.4, %v557_v27  ;;  %v1447_v32 = vpop.f32.mrb[26].mxu0  ;;  %1504 = vmatmul.mubr.msk.f32.gmra.mrb[22].mxu1 %vm273_vm0, %v682_v30 }
 0x128   : > { %v572_v33 = vadd.f32 %v1447_v32, %v1857_v56  ;;  %v566_v34 = vpop.f32.mrb[27].mxu0  ;;  %v684_v38 = vsel %vm620_vm10, %v562_v25, %v652_v29 }
 0x129   : > { %v567_v35 = vadd.f32 %v1857_v56, %v566_v34  ;;  %v683_v36 = vsel %vm619_vm11, %v557_v27, %v651_v31 }
 0x12a   : > { %v654_v37 = vmul.f32 0.4, %v572_v33  ;;  %1506 = vmatprep.mubr.msk.f32.mxu1 %vm273_vm0, %v683_v36  ;;  %vm622_vm12 = vcmp.gt.f32.partialorder %v572_v33, 0.0 }
 0x12b   : > { %vm621_vm13 = vcmp.gt.f32.partialorder %v567_v35, 0.0  ;;  %v653_v39 = vmul.f32 0.4, %v567_v35  ;;  %v1450_v40 = vpop.f32.mrb[28].mxu0  ;;  %1507 = vmatmul.mubr.msk.f32.gmra.mrb[24].mxu1 %vm273_vm0, %v684_v38 }
 0x12c   : > { %v582_v41 = vadd.f32 %v1450_v40, %v1857_v56  ;;  %v576_v42 = vpop.f32.mrb[29].mxu0  ;;  %v686_v46 = vsel %vm622_vm12, %v572_v33, %v654_v37 }
 0x12d   : > { %v577_v43 = vadd.f32 %v1857_v56, %v576_v42  ;;  %v685_v44 = vsel %vm621_vm13, %v567_v35, %v653_v39 }
 0x12e   : > { %v656_v45 = vmul.f32 0.4, %v582_v41  ;;  %1509 = vmatprep.mubr.msk.f32.mxu1 %vm273_vm0, %v685_v44  ;;  %vm624_vm14 = vcmp.gt.f32.partialorder %v582_v41, 0.0 }
 0x12f   : > { %vm623_vm15 = vcmp.gt.f32.partialorder %v577_v43, 0.0  ;;  %v655_v47 = vmul.f32 0.4, %v577_v43  ;;  %v1453_v48 = vpop.f32.mrb[30].mxu0  ;;  %1510 = vmatmul.mubr.msk.f32.gmra.mrb[26].mxu1 %vm273_vm0, %v686_v46 }
 0x130   : > { %v592_v49 = vadd.f32 %v1453_v48, %v1857_v56  ;;  %v586_v50 = vpop.f32.mrb[31].mxu0  ;;  %v688_v54 = vsel %vm624_vm14, %v582_v41, %v656_v45 }
 0x131   : > { %v587_v51 = vadd.f32 %v1857_v56, %v586_v50  ;;  %v687_v52 = vsel %vm623_vm15, %v577_v43, %v655_v47  ;;  %v1927_v56 = vld [vmem:[%s2053_s4] ss:$0 sm:$0xff] }
 0x132   : > { %v658_v53 = vmul.f32 0.4, %v592_v49  ;;  %1512 = vmatprep.mubr.msk.f32.mxu1 %vm273_vm0, %v687_v52  ;;  %vm626_vm1 = vcmp.gt.f32.partialorder %v592_v49, 0.0 }
 0x133   : > { %vm625_vm2 = vcmp.gt.f32.partialorder %v587_v51, 0.0  ;;  %v657_v55 = vmul.f32 0.4, %v587_v51  ;;  %1513 = vmatmul.mubr.msk.f32.gmra.mrb[28].mxu1 %vm273_vm0, %v688_v54 }
 0x134   : > { %v690_v58 = vsel %vm626_vm1, %v592_v49, %v658_v53 }
 0x135   : > { %v689_v57 = vsel %vm625_vm2, %v587_v51, %v657_v55 }
 0x136   : > { %1515 = vmatprep.mubr.msk.f32.mxu1 %vm273_vm0, %v689_v57 }
 0x137   : > { %1516 = vmatmul.mubr.msk.f32.gmra.mrb[30].mxu1 %vm273_vm0, %v690_v58 }
 0x1ce   : > { %v1472_v59 = vpop.f32.mrb[0].mxu1 }
 0x1cf   : > { %v874_v60 = vadd.f32 %v1472_v59, %v1927_v56  ;;  %v868_v61 = vpop.f32.mrb[1].mxu1 }
 0x1d0   : > { %v869_v62 = vadd.f32 %v1927_v56, %v868_v61 }
 0x1d1   : > { %vm1028_vm3 = vcmp.gt.f32.partialorder %v874_v60, 0.0  ;;  %v1060_v63 = vmul.f32 0.4, %v874_v60 }
 0x1d2   : > { %vm1027_vm4 = vcmp.gt.f32.partialorder %v869_v62, 0.0  ;;  %v1059_v0 = vmul.f32 0.4, %v869_v62  ;;  %v1475_v1 = vpop.f32.mrb[2].mxu1 }
 0x1d3   : > { %v1092_v2 = vsel %vm1028_vm3, %v874_v60, %v1060_v63  ;;  %v884_v3 = vadd.f32 %v1475_v1, %v1927_v56  ;;  %v878_v4 = vpop.f32.mrb[3].mxu1 }
 0x1d4   : > { %1124 = vst [vmem:[%s1934_s17 + $0x8] sm:$0xff] %v1092_v2  ;;  %v1091_v5 = vsel %vm1027_vm4, %v869_v62, %v1059_v0  ;;  %v879_v6 = vadd.f32 %v1927_v56, %v878_v4 }
 0x1d5   : > { %1123 = vst [vmem:[%s1934_s17] sm:$0xff] %v1091_v5  ;;  %vm1030_vm0 = vcmp.gt.f32.partialorder %v884_v3, 0.0  ;;  %v1062_v7 = vmul.f32 0.4, %v884_v3 }
 0x1d6   : > { %vm1029_vm5 = vcmp.gt.f32.partialorder %v879_v6, 0.0  ;;  %v1061_v8 = vmul.f32 0.4, %v879_v6  ;;  %v1478_v9 = vpop.f32.mrb[4].mxu1 }
 0x1d7   : > { %v1094_v10 = vsel %vm1030_vm0, %v884_v3, %v1062_v7  ;;  %v894_v11 = vadd.f32 %v1478_v9, %v1927_v56  ;;  %v888_v12 = vpop.f32.mrb[5].mxu1 }
 0x1d8   : > { %1126 = vst [vmem:[%s1934_s17 + $0x18] sm:$0xff] %v1094_v10  ;;  %v1093_v13 = vsel %vm1029_vm5, %v879_v6, %v1061_v8  ;;  %v889_v14 = vadd.f32 %v1927_v56, %v888_v12 }
 0x1d9   : > { %1125 = vst [vmem:[%s1934_s17 + $0x10] sm:$0xff] %v1093_v13  ;;  %vm1032_vm6 = vcmp.gt.f32.partialorder %v894_v11, 0.0  ;;  %v1064_v15 = vmul.f32 0.4, %v894_v11 }
 0x1da   : > { %vm1031_vm7 = vcmp.gt.f32.partialorder %v889_v14, 0.0  ;;  %v1063_v16 = vmul.f32 0.4, %v889_v14  ;;  %v1481_v17 = vpop.f32.mrb[6].mxu1 }
 0x1db   : > { %v1096_v18 = vsel %vm1032_vm6, %v894_v11, %v1064_v15  ;;  %v904_v19 = vadd.f32 %v1481_v17, %v1927_v56  ;;  %v898_v20 = vpop.f32.mrb[7].mxu1 }
 0x1dc   : > { %1128 = vst [vmem:[%s1934_s17 + $0x28] sm:$0xff] %v1096_v18  ;;  %v1095_v21 = vsel %vm1031_vm7, %v889_v14, %v1063_v16  ;;  %v899_v22 = vadd.f32 %v1927_v56, %v898_v20 }
 0x1dd   : > { %1127 = vst [vmem:[%s1934_s17 + $0x20] sm:$0xff] %v1095_v21  ;;  %vm1034_vm8 = vcmp.gt.f32.partialorder %v904_v19, 0.0  ;;  %v1066_v23 = vmul.f32 0.4, %v904_v19 }
 0x1de   : > { %vm1033_vm9 = vcmp.gt.f32.partialorder %v899_v22, 0.0  ;;  %v1065_v24 = vmul.f32 0.4, %v899_v22  ;;  %v1484_v25 = vpop.f32.mrb[8].mxu1 }
 0x1df   : > { %v1098_v26 = vsel %vm1034_vm8, %v904_v19, %v1066_v23  ;;  %v914_v27 = vadd.f32 %v1484_v25, %v1927_v56  ;;  %v908_v28 = vpop.f32.mrb[9].mxu1 }
 0x1e0   : > { %1130 = vst [vmem:[%s1934_s17 + $0x38] sm:$0xff] %v1098_v26  ;;  %v1097_v29 = vsel %vm1033_vm9, %v899_v22, %v1065_v24  ;;  %v909_v30 = vadd.f32 %v1927_v56, %v908_v28 }
 0x1e1   : > { %1129 = vst [vmem:[%s1934_s17 + $0x30] sm:$0xff] %v1097_v29  ;;  %vm1036_vm10 = vcmp.gt.f32.partialorder %v914_v27, 0.0  ;;  %v1068_v31 = vmul.f32 0.4, %v914_v27 }
 0x1e2   : > { %vm1035_vm11 = vcmp.gt.f32.partialorder %v909_v30, 0.0  ;;  %v1067_v32 = vmul.f32 0.4, %v909_v30  ;;  %v1487_v33 = vpop.f32.mrb[10].mxu1 }
 0x1e3   : > { %v1100_v34 = vsel %vm1036_vm10, %v914_v27, %v1068_v31  ;;  %v924_v35 = vadd.f32 %v1487_v33, %v1927_v56  ;;  %v918_v36 = vpop.f32.mrb[11].mxu1 }
 0x1e4   : > { %1132 = vst [vmem:[%s1934_s17 + $0x48] sm:$0xff] %v1100_v34  ;;  %v1099_v37 = vsel %vm1035_vm11, %v909_v30, %v1067_v32  ;;  %v919_v38 = vadd.f32 %v1927_v56, %v918_v36 }
 0x1e5   : > { %1131 = vst [vmem:[%s1934_s17 + $0x40] sm:$0xff] %v1099_v37  ;;  %vm1038_vm12 = vcmp.gt.f32.partialorder %v924_v35, 0.0  ;;  %v1070_v39 = vmul.f32 0.4, %v924_v35 }
 0x1e6   : > { %vm1037_vm13 = vcmp.gt.f32.partialorder %v919_v38, 0.0  ;;  %v1069_v40 = vmul.f32 0.4, %v919_v38  ;;  %v1490_v41 = vpop.f32.mrb[12].mxu1 }
 0x1e7   : > { %v1102_v42 = vsel %vm1038_vm12, %v924_v35, %v1070_v39  ;;  %v934_v43 = vadd.f32 %v1490_v41, %v1927_v56  ;;  %v928_v44 = vpop.f32.mrb[13].mxu1 }
 0x1e8   : > { %1134 = vst [vmem:[%s1934_s17 + $0x58] sm:$0xff] %v1102_v42  ;;  %v1101_v45 = vsel %vm1037_vm13, %v919_v38, %v1069_v40  ;;  %v929_v46 = vadd.f32 %v1927_v56, %v928_v44 }
 0x1e9   : > { %1133 = vst [vmem:[%s1934_s17 + $0x50] sm:$0xff] %v1101_v45  ;;  %vm1040_vm14 = vcmp.gt.f32.partialorder %v934_v43, 0.0  ;;  %v1072_v47 = vmul.f32 0.4, %v934_v43 }
 0x1ea   : > { %vm1039_vm15 = vcmp.gt.f32.partialorder %v929_v46, 0.0  ;;  %v1071_v48 = vmul.f32 0.4, %v929_v46  ;;  %v1493_v49 = vpop.f32.mrb[14].mxu1 }
 0x1eb   : > { %v1104_v50 = vsel %vm1040_vm14, %v934_v43, %v1072_v47  ;;  %v944_v51 = vadd.f32 %v1493_v49, %v1927_v56  ;;  %v938_v52 = vpop.f32.mrb[15].mxu1 }
 0x1ec   : > { %1136 = vst [vmem:[%s1934_s17 + $0x68] sm:$0xff] %v1104_v50  ;;  %v1103_v53 = vsel %vm1039_vm15, %v929_v46, %v1071_v48  ;;  %v939_v54 = vadd.f32 %v1927_v56, %v938_v52 }
 0x1ed   : > { %1135 = vst [vmem:[%s1934_s17 + $0x60] sm:$0xff] %v1103_v53  ;;  %vm1042_vm1 = vcmp.gt.f32.partialorder %v944_v51, 0.0  ;;  %v1074_v55 = vmul.f32 0.4, %v944_v51 }
 0x1ee   : > { %vm1041_vm2 = vcmp.gt.f32.partialorder %v939_v54, 0.0  ;;  %v1073_v57 = vmul.f32 0.4, %v939_v54  ;;  %v1496_v58 = vpop.f32.mrb[16].mxu1 }
 0x1ef   : > { %v1106_v59 = vsel %vm1042_vm1, %v944_v51, %v1074_v55  ;;  %v954_v60 = vadd.f32 %v1496_v58, %v1927_v56  ;;  %v948_v61 = vpop.f32.mrb[17].mxu1 }
 0x1f0   : > { %1138 = vst [vmem:[%s1934_s17 + $0x78] sm:$0xff] %v1106_v59  ;;  %v1105_v62 = vsel %vm1041_vm2, %v939_v54, %v1073_v57  ;;  %v949_v63 = vadd.f32 %v1927_v56, %v948_v61 }
 0x1f1   : > { %1137 = vst [vmem:[%s1934_s17 + $0x70] sm:$0xff] %v1105_v62  ;;  %vm1044_vm3 = vcmp.gt.f32.partialorder %v954_v60, 0.0  ;;  %v1076_v0 = vmul.f32 0.4, %v954_v60 }
 0x1f2   : > { %vm1043_vm4 = vcmp.gt.f32.partialorder %v949_v63, 0.0  ;;  %v1075_v1 = vmul.f32 0.4, %v949_v63  ;;  %v1499_v2 = vpop.f32.mrb[18].mxu1 }
 0x1f3   : > { %v1108_v3 = vsel %vm1044_vm3, %v954_v60, %v1076_v0  ;;  %v964_v4 = vadd.f32 %v1499_v2, %v1927_v56  ;;  %v958_v5 = vpop.f32.mrb[19].mxu1 }
 0x1f4   : > { %1140 = vst [vmem:[%s1934_s17 + $0x88] sm:$0xff] %v1108_v3  ;;  %v1107_v6 = vsel %vm1043_vm4, %v949_v63, %v1075_v1  ;;  %v959_v7 = vadd.f32 %v1927_v56, %v958_v5 }
 0x1f5   : > { %1139 = vst [vmem:[%s1934_s17 + $0x80] sm:$0xff] %v1107_v6  ;;  %vm1046_vm0 = vcmp.gt.f32.partialorder %v964_v4, 0.0  ;;  %v1078_v8 = vmul.f32 0.4, %v964_v4 }
 0x1f6   : > { %vm1045_vm5 = vcmp.gt.f32.partialorder %v959_v7, 0.0  ;;  %v1077_v9 = vmul.f32 0.4, %v959_v7  ;;  %v1502_v10 = vpop.f32.mrb[20].mxu1 }
 0x1f7   : > { %v1110_v11 = vsel %vm1046_vm0, %v964_v4, %v1078_v8  ;;  %v974_v12 = vadd.f32 %v1502_v10, %v1927_v56  ;;  %v968_v13 = vpop.f32.mrb[21].mxu1 }
 0x1f8   : > { %1142 = vst [vmem:[%s1934_s17 + $0x98] sm:$0xff] %v1110_v11  ;;  %v1109_v14 = vsel %vm1045_vm5, %v959_v7, %v1077_v9  ;;  %v969_v15 = vadd.f32 %v1927_v56, %v968_v13 }
 0x1f9   : > { %1141 = vst [vmem:[%s1934_s17 + $0x90] sm:$0xff] %v1109_v14  ;;  %vm1048_vm6 = vcmp.gt.f32.partialorder %v974_v12, 0.0  ;;  %v1080_v16 = vmul.f32 0.4, %v974_v12 }
 0x1fa   : > { %vm1047_vm7 = vcmp.gt.f32.partialorder %v969_v15, 0.0  ;;  %v1079_v17 = vmul.f32 0.4, %v969_v15  ;;  %v1505_v18 = vpop.f32.mrb[22].mxu1 }
 0x1fb   : > { %v1112_v19 = vsel %vm1048_vm6, %v974_v12, %v1080_v16  ;;  %v984_v20 = vadd.f32 %v1505_v18, %v1927_v56  ;;  %v978_v21 = vpop.f32.mrb[23].mxu1 }
 0x1fc   : > { %1144 = vst [vmem:[%s1934_s17 + $0xa8] sm:$0xff] %v1112_v19  ;;  %v1111_v22 = vsel %vm1047_vm7, %v969_v15, %v1079_v17  ;;  %v979_v23 = vadd.f32 %v1927_v56, %v978_v21 }
 0x1fd   : > { %1143 = vst [vmem:[%s1934_s17 + $0xa0] sm:$0xff] %v1111_v22  ;;  %vm1050_vm8 = vcmp.gt.f32.partialorder %v984_v20, 0.0  ;;  %v1082_v24 = vmul.f32 0.4, %v984_v20 }
 0x1fe   : > { %vm1049_vm9 = vcmp.gt.f32.partialorder %v979_v23, 0.0  ;;  %v1081_v25 = vmul.f32 0.4, %v979_v23  ;;  %v1508_v26 = vpop.f32.mrb[24].mxu1 }
 0x1ff   : > { %v1114_v27 = vsel %vm1050_vm8, %v984_v20, %v1082_v24  ;;  %v994_v28 = vadd.f32 %v1508_v26, %v1927_v56  ;;  %v988_v29 = vpop.f32.mrb[25].mxu1 }
 0x200   : > { %1146 = vst [vmem:[%s1934_s17 + $0xb8] sm:$0xff] %v1114_v27  ;;  %v1113_v30 = vsel %vm1049_vm9, %v979_v23, %v1081_v25  ;;  %v989_v31 = vadd.f32 %v1927_v56, %v988_v29 }
 0x201   : > { %1145 = vst [vmem:[%s1934_s17 + $0xb0] sm:$0xff] %v1113_v30  ;;  %vm1052_vm10 = vcmp.gt.f32.partialorder %v994_v28, 0.0  ;;  %v1084_v32 = vmul.f32 0.4, %v994_v28 }
 0x202   : > { %vm1051_vm11 = vcmp.gt.f32.partialorder %v989_v31, 0.0  ;;  %v1083_v33 = vmul.f32 0.4, %v989_v31  ;;  %v1511_v34 = vpop.f32.mrb[26].mxu1 }
 0x203   : > { %v1116_v35 = vsel %vm1052_vm10, %v994_v28, %v1084_v32  ;;  %v1004_v36 = vadd.f32 %v1511_v34, %v1927_v56  ;;  %v998_v37 = vpop.f32.mrb[27].mxu1 }
 0x204   : > { %1148 = vst [vmem:[%s1934_s17 + $0xc8] sm:$0xff] %v1116_v35  ;;  %v1115_v38 = vsel %vm1051_vm11, %v989_v31, %v1083_v33  ;;  %v999_v39 = vadd.f32 %v1927_v56, %v998_v37 }
 0x205   : > { %1147 = vst [vmem:[%s1934_s17 + $0xc0] sm:$0xff] %v1115_v38  ;;  %vm1054_vm12 = vcmp.gt.f32.partialorder %v1004_v36, 0.0  ;;  %v1086_v40 = vmul.f32 0.4, %v1004_v36 }
 0x206   : > { %vm1053_vm13 = vcmp.gt.f32.partialorder %v999_v39, 0.0  ;;  %v1085_v41 = vmul.f32 0.4, %v999_v39  ;;  %v1514_v42 = vpop.f32.mrb[28].mxu1 }
 0x207   : > { %v1118_v43 = vsel %vm1054_vm12, %v1004_v36, %v1086_v40  ;;  %v1014_v44 = vadd.f32 %v1514_v42, %v1927_v56  ;;  %v1008_v45 = vpop.f32.mrb[29].mxu1 }
 0x208   : > { %1150 = vst [vmem:[%s1934_s17 + $0xd8] sm:$0xff] %v1118_v43  ;;  %v1117_v46 = vsel %vm1053_vm13, %v999_v39, %v1085_v41  ;;  %v1009_v47 = vadd.f32 %v1927_v56, %v1008_v45 }
 0x209   : > { %1149 = vst [vmem:[%s1934_s17 + $0xd0] sm:$0xff] %v1117_v46  ;;  %vm1056_vm14 = vcmp.gt.f32.partialorder %v1014_v44, 0.0  ;;  %v1088_v48 = vmul.f32 0.4, %v1014_v44 }
 0x20a   : > { %vm1055_vm15 = vcmp.gt.f32.partialorder %v1009_v47, 0.0  ;;  %v1087_v49 = vmul.f32 0.4, %v1009_v47  ;;  %v1517_v50 = vpop.f32.mrb[30].mxu1 }
 0x20b   : > { %v1120_v51 = vsel %vm1056_vm14, %v1014_v44, %v1088_v48  ;;  %v1024_v52 = vadd.f32 %v1517_v50, %v1927_v56  ;;  %v1018_v53 = vpop.f32.mrb[31].mxu1 }
 0x20c   : > { %1152 = vst [vmem:[%s1934_s17 + $0xe8] sm:$0xff] %v1120_v51  ;;  %v1119_v54 = vsel %vm1055_vm15, %v1009_v47, %v1087_v49  ;;  %v1019_v55 = vadd.f32 %v1927_v56, %v1018_v53 }
 0x20d   : > { %1151 = vst [vmem:[%s1934_s17 + $0xe0] sm:$0xff] %v1119_v54  ;;  %vm1058_vm1 = vcmp.gt.f32.partialorder %v1024_v52, 0.0  ;;  %v1090_v57 = vmul.f32 0.4, %v1024_v52 }
 0x20e   : > { %vm1057_vm2 = vcmp.gt.f32.partialorder %v1019_v55, 0.0  ;;  %v1089_v58 = vmul.f32 0.4, %v1019_v55 }
 0x20f   : > { %v1122_v59 = vsel %vm1058_vm1, %v1024_v52, %v1090_v57 }
 0x210   : > { %1154 = vst [vmem:[%s1934_s17 + $0xf8] sm:$0xff] %v1122_v59  ;;  %v1121_v60 = vsel %vm1057_vm2, %v1019_v55, %v1089_v58 }
 0x211   : > { %1153 = vst [vmem:[%s1934_s17 + $0xf0] sm:$0xff] %v1121_v60 }
 0x212   : > { %1604 = shalt.err (!%p1601_p3)
}
 0x213   : > { %s1605_s10 = scalar_lea.hbm %s2000_s30, 4096  ;;  %s1609_s14 = scalar_lea.hbm %s2054_s5, 8192 }
 0x214   : > { %p1606_p4 = scmp.ne.s32.totalorder %s2000_s30, %s1605_s10  ;;  %p1610_p9 = scmp.lt.u32.totalorder %s2000_s30, %s2054_s5 }
 0x215   : > { %p1611_p10 = scmp.lt.u32.totalorder %s1609_s14, %s1605_s10  ;;  %p1613_p12 = scmp.lt.u32.totalorder %s1605_s10, %s2000_s30 }
 0x216   : > { %p1607_p7 = pnand %p1606_p4, %p1726_p5 }
 0x217   : > { %p1612_p11 = por %p1611_p10, %p1610_p9 }
 0x218   : > { %p1608_p8 = pneg %p1607_p7 }
 0x219   : > { %p1614_p13 = por %p1613_p12, %p1612_p11 }
 0x21b   : > { %p1615_p0 = pnand %p1614_p13, %p1608_p8 }
 0x21d   : > { %1618 = shalt.err (!%p1615_p0)
}
 0x21e   : > { %s1656_s17 = smov 128   ;;  %s1657_s23 = smov 8  }
 0x21f   : > { %1550 = dma.vmem_to_hbm [thread:$0]  (%p1726_p5), %s2002_s11, 4096, %s2000_s30, %s2008_s22, %s1656_s17, %s1656_s17, %s1657_s23  }
 0x220 PF: > { %p1556_p1 = scmp.ge.s32.totalorder %s1653_s21, 2  ;;  %s1184_s25 = sand.u32 1, %s1641_s18  }
 0x221   : > { %s1185_s26 = scalar_lea.sflag [#allocation3], %s1184_s25 }
 0x222   : > { %p1553_p2 = pnand %p1556_p1, %p1730_p6 }
 0x224   : > { %1636 = dma.done.wait (!%p1553_p2), %s1185_s26, 4096  }
 0x225   : > { %1638 = vsyncadd (!%p1553_p2), %s1185_s26, 4294963200  ;;  %p15_p3 = scmp.ge.s32.totalorder %s1713_s24, 4   ;;  %s2057_s18 = smov %s1645_s19 }
 0x226   : > { %s2058_s19 = smov %s1649_s20  ;;  %s2059_s20 = smov %s1724_s27 }
 0x227   : > { %s2060_s21 = smov %s1713_s24  ;;  %17 = sbr.rel (!%p15_p3) target bundleno = 3 (0x3), region = 75 }
 0x22e   :  { %1190 = vsyncpa [#allocation3], 1 }
 0x22f   :  { %1192 = vsyncpa [#allocation3 + $0x1], 1 }

</bundles_post_ra>
